<compile_context>
chip_gen: v6e
topology: v6e:2x2x1
jax: 0.10.0
libtpu: 0.0.40
codegen_flags: <defaults>
</compile_context>

<pallas_src>
import jax
import jax.numpy as jnp
from jax.experimental import pallas as pl
from jax.experimental.pallas import tpu as pltpu

_LANES = 128
_SUBLANES = 8


def _mse_with_logits_kernel(logits_ref, targets_ref, loss_ref):
    # Cast inside the kernel: HBM reads stay narrow (e.g. bf16); math runs in
    # f32 for accuracy (and v5e has no bf16 VPU/EUP anyway).
    logits = logits_ref[...].astype(jnp.float32)
    targets = targets_ref[...]

    # sigmoid + clamp (same order as the reference)
    inputs = jax.nn.sigmoid(logits)
    inputs = jnp.clip(inputs, 0.0001, 1.0 - 0.0001)

    # exact-equality masks against 1.0 / 0.0, matching the reference
    pos_id = (targets == 1.0).astype(jnp.float32)
    neg_id = (targets == 0.0).astype(jnp.float32)

    diff = inputs - targets.astype(jnp.float32)
    loss = 5.0 * (pos_id * diff * diff) + neg_id * (inputs * inputs)

    loss_ref[...] = loss.astype(loss_ref.dtype)


def mse_with_logits_loss(logits, targets, *, row_tile=1024):
    """Elementwise YOLOv1 MSE-with-logits loss.

    Returns the unreduced per-element loss with the same shape and dtype as
    `logits` (matching the PyTorch module).
    """
    assert logits.shape == targets.shape, "logits/targets must match in shape"
    orig_shape = logits.shape
    out_dtype = logits.dtype

    n = logits.size
    chunk = _SUBLANES * _LANES  # 1024: keeps rows a multiple of 8
    pad = (-n) % chunk          # tiny tail only; 0 for typical NCHW sizes

    lf = logits.reshape(-1)
    tf = targets.reshape(-1)
    if pad:
        # pad targets with -1.0 so padded elements hit neither mask
        lf = jnp.pad(lf, (0, pad))
        tf = jnp.pad(tf, (0, pad), constant_values=-1.0)

    rows = (n + pad) // _LANES
    lf = lf.reshape(rows, _LANES)
    tf = tf.reshape(rows, _LANES)

    # Big blocks to amortize per-step overhead; partial last block handled by
    # Pallas (out-of-bounds writes are dropped, valid region is sliced below).
    tile = min(row_tile, rows)
    grid = (pl.cdiv(rows, tile),)
    spec = pl.BlockSpec((tile, _LANES), lambda i: (i, 0))

    out = pl.pallas_call(
        _mse_with_logits_kernel,
        out_shape=jax.ShapeDtypeStruct((rows, _LANES), out_dtype),
        grid=grid,
        in_specs=[spec, spec],
        out_specs=spec,
        compiler_params=pltpu.CompilerParams(
            dimension_semantics=("parallel",)),
    )(lf, tf)

    out = out.reshape(-1)
    if pad:
        out = out[:n]
    return out.reshape(orig_shape)


def _reference(logits, targets):
    inputs = jnp.clip(jax.nn.sigmoid(logits.astype(jnp.float32)),
                      0.0001, 1.0 - 0.0001)
    targets = targets.astype(jnp.float32)
    pos_id = (targets == 1.0).astype(jnp.float32)
    neg_id = (targets == 0.0).astype(jnp.float32)
    pos_loss = pos_id * (inputs - targets) ** 2
    neg_loss = neg_id * inputs ** 2
    return (5.0 * pos_loss + 1.0 * neg_loss).astype(logits.dtype)


if __name__ == "__main__":
    key = jax.random.PRNGKey(0)
    k1, k2 = jax.random.split(key)

    # Small shape consistent with a YOLOv1 objectness map: [B, C, H, W]
    B, C, H, W = 2, 4, 16, 16
    logits = jax.random.normal(k1, (B, C, H, W), dtype=jnp.float32)
    # targets are exact {0, 1} objectness labels (matching the == tests)
    targets = (jax.random.uniform(k2, (B, C, H, W)) > 0.8).astype(jnp.float32)

    loss = mse_with_logits_loss(logits, targets)
    jax.block_until_ready(loss)

    ref = _reference(logits, targets)
    assert loss.shape == logits.shape and loss.dtype == logits.dtype
    assert jnp.allclose(loss, ref, atol=1e-6, rtol=1e-6), "mismatch vs reference"

    # Also exercise a non-multiple-of-1024 size (tail-pad + partial block path)
    n_odd = 3 * 7 * 13 * 5  # 1365 elements
    lo = jax.random.normal(k1, (3, 7, 13, 5), dtype=jnp.float32)
    to = (jax.random.uniform(k2, (3, 7, 13, 5)) > 0.8).astype(jnp.float32)
    lo_loss = mse_with_logits_loss(lo, to)
    jax.block_until_ready(lo_loss)
    assert jnp.allclose(lo_loss, _reference(lo, to), atol=1e-6, rtol=1e-6)

    print("KERNEL_OK")
</pallas_src>

<mosaic_0001>
module attributes {stable_mosaic.version = 11 : i64} {
  func.func @_mse_with_logits_kernel(%arg0: i32, %arg1: memref<16x128xf32, #tpu.memory_space<vmem>>, %arg2: memref<16x128xf32, #tpu.memory_space<vmem>>, %arg3: memref<16x128xf32, #tpu.memory_space<vmem>>) attributes {dimension_semantics = [#tpu.dimension_semantics<parallel>], iteration_bounds = array<i64: 1>, scalar_prefetch = 0 : i64, scratch_operands = 0 : i64, tpu.core_type = #tpu.core_type<tc>, window_params = [{transform_indices = @transform_0, window_bounds = array<i64: 16, 128>}, {transform_indices = @transform_1, window_bounds = array<i64: 16, 128>}, {transform_indices = @transform_2, window_bounds = array<i64: 16, 128>}]} {
    %c0 = arith.constant 0 : index
    %c0_0 = arith.constant 0 : index
    %0 = vector.load %arg1[%c0, %c0_0] : memref<16x128xf32, #tpu.memory_space<vmem>>, vector<16x128xf32>
    %c0_1 = arith.constant 0 : index
    %c0_2 = arith.constant 0 : index
    %1 = vector.load %arg2[%c0_1, %c0_2] : memref<16x128xf32, #tpu.memory_space<vmem>>, vector<16x128xf32>
    %2 = arith.negf %0 : vector<16x128xf32>
    %3 = math.exp %2 : vector<16x128xf32>
    %cst = arith.constant 1.000000e+00 : f32
    %4 = vector.broadcast %cst : f32 to vector<16x128xf32>
    %5 = arith.addf %4, %3 : vector<16x128xf32>
    %6 = arith.divf %4, %5 : vector<16x128xf32>
    %cst_3 = arith.constant 9.99999974E-5 : f32
    %cst_4 = arith.constant 0.999899983 : f32
    %7 = vector.broadcast %cst_3 : f32 to vector<16x128xf32>
    %8 = arith.maximumf %7, %6 : vector<16x128xf32>
    %9 = vector.broadcast %cst_4 : f32 to vector<16x128xf32>
    %10 = arith.minimumf %9, %8 : vector<16x128xf32>
    %cst_5 = arith.constant 1.000000e+00 : f32
    %11 = vector.broadcast %cst_5 : f32 to vector<16x128xf32>
    %12 = arith.cmpf oeq, %1, %11 : vector<16x128xf32>
    %13 = arith.extui %12 : vector<16x128xi1> to vector<16x128xi32>
    %14 = arith.sitofp %13 : vector<16x128xi32> to vector<16x128xf32>
    %cst_6 = arith.constant 0.000000e+00 : f32
    %15 = vector.broadcast %cst_6 : f32 to vector<16x128xf32>
    %16 = arith.cmpf oeq, %1, %15 : vector<16x128xf32>
    %17 = arith.extui %16 : vector<16x128xi1> to vector<16x128xi32>
    %18 = arith.sitofp %17 : vector<16x128xi32> to vector<16x128xf32>
    %19 = arith.subf %10, %1 : vector<16x128xf32>
    %20 = arith.mulf %14, %19 : vector<16x128xf32>
    %21 = arith.mulf %20, %19 : vector<16x128xf32>
    %cst_7 = arith.constant 5.000000e+00 : f32
    %22 = vector.broadcast %cst_7 : f32 to vector<16x128xf32>
    %23 = arith.mulf %22, %21 : vector<16x128xf32>
    %24 = arith.mulf %10, %10 : vector<16x128xf32>
    %25 = arith.mulf %18, %24 : vector<16x128xf32>
    %26 = arith.addf %23, %25 : vector<16x128xf32>
    %c0_8 = arith.constant 0 : index
    %c0_9 = arith.constant 0 : index
    %27 = vector.load %arg3[%c0_8, %c0_9] : memref<16x128xf32, #tpu.memory_space<vmem>>, vector<16x128xf32>
    tpu.vector_store %arg3[%c0_8, %c0_9], %26 {strides = array<i32>} : memref<16x128xf32, #tpu.memory_space<vmem>>, vector<16x128xf32>,
    return
  }
  func.func @transform_0(%arg0: i32) -> (i32, i32) {
    %c0_i32 = arith.constant 0 : i32
    %c0_i32_0 = arith.constant 0 : i32
    return %arg0, %c0_i32 : i32, i32
  }
  func.func @transform_1(%arg0: i32) -> (i32, i32) {
    %c0_i32 = arith.constant 0 : i32
    %c0_i32_0 = arith.constant 0 : i32
    return %arg0, %c0_i32 : i32, i32
  }
  func.func @transform_2(%arg0: i32) -> (i32, i32) {
    %c0_i32 = arith.constant 0 : i32
    %c0_i32_0 = arith.constant 0 : i32
    return %arg0, %c0_i32 : i32, i32
  }
}

</mosaic_0001>

<bundles_post_ra>
// kernel: tpu_custom_call.1
= control target key start
LH: loop header
LB: loop body
LE: loop exit
PB: predicated region body
PF: predicated region fallthrough
CT: control target
= control target key end

     0   :  { %7 = vsyncpa [#allocation3], 0  ;;  %s231_s0 = inlined_call_operand.hbm [shape: f32[16,128], index: 0, kind: input, shape index: {}]   ;;  %s232_s1 = inlined_call_operand.hbm [shape: f32[16,128], index: 1, kind: input, shape index: {}]   ;;  %s233_s2 = inlined_call_operand.hbm [shape: f32[16,128], index: 2, kind: output, shape index: {}]  }
   0x1   :  { %8 = vsyncpa [#allocation6], 0 }
   0x2   :  { %9 = vsyncpa [#allocation4], 0  ;;  %s192_s9 = smov [#allocation2]  }
   0x3   :  { %s15_s10 = sshll.u32 %s192_s9, 4  ;;  %s16_s10 = int_to_ptr.vmem [resolvable:$true] %s15_s10 }
   0x4   :  { %s134_s11 = scalar_lea.vmem %s16_s10, 256  ;;  %p139_p1 = scmp.lt.s32.totalorder %s16_s10, %s16_s10 }
   0x5   :  { %p135_p0 = scmp.ne.s32.totalorder %s16_s10, %s134_s11  ;;  %p140_p2 = scmp.lt.s32.totalorder %s134_s11, %s134_s11 }
   0x7   :  { %p141_p3 = por %p140_p2, %p139_p1 }
   0x9   :  { %p142_p4 = pnand %p141_p3, %p135_p0 }
   0xb   :  { %145 = shalt.err (!%p142_p4)
}
   0xc   :  { %s193_s12 = smov 128   ;;  %s194_s13 = smov 8  }
   0xd   :  { %21 = dma.hbm_to_vmem [thread:$0]  %s231_s0, 256, %s16_s10, [#allocation3], %s193_s12, %s193_s12, %s194_s13  }
   0xe   :  { %s195_s16 = smov [#allocation5]  }
   0xf   :  { %s27_s17 = sshll.u32 %s195_s16, 4  ;;  %s28_s17 = int_to_ptr.vmem [resolvable:$true] %s27_s17 }
  0x10   :  { %s154_s18 = scalar_lea.vmem %s28_s17, 256  ;;  %p159_p6 = scmp.lt.s32.totalorder %s28_s17, %s28_s17 }
  0x11   :  { %p155_p5 = scmp.ne.s32.totalorder %s28_s17, %s154_s18  ;;  %p160_p7 = scmp.lt.s32.totalorder %s154_s18, %s154_s18 }
  0x13   :  { %p161_p8 = por %p160_p7, %p159_p6 }
  0x15   :  { %p162_p9 = pnand %p161_p8, %p155_p5 }
  0x17   :  { %165 = shalt.err (!%p162_p9)
}
  0x18   :  { %33 = dma.hbm_to_vmem [thread:$0]  %s232_s1, 256, %s28_s17, [#allocation6], %s193_s12, %s193_s12, %s194_s13  }
  0x19   :  { %186 = dma.done.wait [#allocation3], 256  }
  0x1a   :  { %187 = vsyncadd [#allocation3], 4294967040 }
  0x1b   :  { %188 = dma.done.wait [#allocation6], 256  }
  0x1c   :  { %189 = vsyncadd [#allocation6], 4294967040  ;;  %v40_v0 = vld [vmem:[#allocation2] sm:$0xff]  ;;  %v41_v1 = vld [vmem:[#allocation2 + $0x8] sm:$0xff]  ;;  %v196_v15 = vmov 0.0   ;;  %s197_s0 = smov [#allocation7]  }
  0x1d   :  { %v106_v2 = vmul.f32 -1.442695, %v40_v0  ;;  %v107_v3 = vmul.f32 -1.442695, %v41_v1  ;;  %v42_v8 = vld [vmem:[#allocation5] sm:$0xff]  ;;  %v43_v9 = vld [vmem:[#allocation5 + $0x8] sm:$0xff] }
  0x1e   :  { %vm60_vm0 = vcmp.eq.f32.partialorder %v42_v8, 1.0  ;;  %vm61_vm1 = vcmp.eq.f32.partialorder %v43_v9, 1.0  ;;  %vm66_vm2 = vcmp.eq.f32.partialorder %v42_v8, 0.0  ;;  %vm67_vm3 = vcmp.eq.f32.partialorder %v43_v9, 0.0  ;;  %s93_s1 = sshll.u32 %s197_s0, 4  ;;  %s94_s1 = int_to_ptr.vmem [resolvable:$true] %s93_s1 }
  0x1f   :  { %118 = vpow2.f32 %v106_v2  ;;  %v108_v16 = vsel %vm60_vm0, 1.0, %v196_v15  ;;  %v109_v20 = vsel %vm61_vm1, 1.0, %v196_v15  ;;  %v110_v21 = vsel %vm66_vm2, 1.0, %v196_v15  ;;  %s166_s21 = scalar_lea.vmem %s94_s1, 256  ;;  %p171_p11 = scmp.lt.s32.totalorder %s94_s1, %s94_s1 }
  0x20   :  { %120 = vpow2.f32 %v107_v3  ;;  %v111_v25 = vsel %vm67_vm3, 1.0, %v196_v15  ;;  %p167_p10 = scmp.ne.s32.totalorder %s94_s1, %s166_s21  ;;  %p172_p12 = scmp.lt.s32.totalorder %s166_s21, %s166_s21 }
  0x22   :  { %p173_p13 = por %p172_p12, %p171_p11 }
  0x24   :  { %p174_p0 = pnand %p173_p13, %p167_p10 }
  0x2c   :  { %v119_v4 = vpop.eup %118 }
  0x2d   :  { %v121_v5 = vpop.eup %120  ;;  %v50_v6 = vadd.f32 1.0, %v119_v4 }
  0x2e   :  { %v51_v7 = vadd.f32 1.0, %v121_v5 }
  0x2f   :  { %122 = vrcp.f32 %v50_v6 }
  0x30   :  { %124 = vrcp.f32 %v51_v7 }
  0x3c   :  { %v123_v10 = vpop.eup %122 }
  0x3d   :  { %v125_v11 = vpop.eup %124  ;;  %v56_v12 = vmax.f32 %v123_v10, 0.0001 }
  0x3e   :  { %v57_v13 = vmax.f32 %v125_v11, 0.0001 }
  0x3f   :  { %v58_v14 = vmin.f32 %v56_v12, 0.9999 }
  0x40   :  { %v59_v17 = vmin.f32 %v57_v13, 0.9999 }
  0x41   :  { %v72_v18 = vsub.f32 %v58_v14, %v42_v8  ;;  %v80_v19 = vmul.f32 %v58_v14, %v58_v14 }
  0x42   :  { %v73_v22 = vsub.f32 %v59_v17, %v43_v9  ;;  %v81_v23 = vmul.f32 %v59_v17, %v59_v17 }
  0x43   :  { %v74_v24 = vmul.f32 %v108_v16, %v72_v18  ;;  %v82_v28 = vmul.f32 %v110_v21, %v80_v19 }
  0x44   :  { %v75_v26 = vmul.f32 %v109_v20, %v73_v22  ;;  %v83_v30 = vmul.f32 %v111_v25, %v81_v23 }
  0x45   :  { %v76_v27 = vmul.f32 %v74_v24, %v72_v18 }
  0x46   :  { %v77_v29 = vmul.f32 %v75_v26, %v73_v22 }
  0x47   :  { %v78_v31 = vmul.f32 5.0, %v76_v27 }
  0x48   :  { %v79_v32 = vmul.f32 5.0, %v77_v29 }
  0x49   :  { %v84_v33 = vadd.f32 %v82_v28, %v78_v31 }
  0x4a   :  { %v85_v34 = vadd.f32 %v83_v30, %v79_v32 }
  0x4b   :  { %86 = vst [vmem:[#allocation7] sm:$0xff] %v84_v33 }
  0x4c   :  { %87 = vst [vmem:[#allocation7 + $0x8] sm:$0xff] %v85_v34 }
  0x4d   :  { %177 = shalt.err (!%p174_p0)
}
  0x4e   :  { %99 = dma.vmem_to_hbm [thread:$0]  %s94_s1, 256, %s233_s2, [#allocation4], %s193_s12, %s193_s12, %s194_s13  }
  0x4f   :  { %190 = dma.done.wait [#allocation4], 256  }
  0x50   :  { %191 = vsyncadd [#allocation4], 4294967040 }
  0x51   :  { %103 = vsyncpa [#allocation3], 1 }
  0x52   :  { %104 = vsyncpa [#allocation6], 1 }
  0x53   :  { %105 = vsyncpa [#allocation4], 1 }

</bundles_post_ra>
